<compile_context>
chip_gen: v6e
topology: v6e:2x2x1
jax: 0.10.0
libtpu: 0.0.40
codegen_flags: <defaults>
</compile_context>

<pallas_src>
import jax
import jax.numpy as jnp
from jax.experimental import pallas as pl
from jax.experimental.pallas import tpu as pltpu

EPS = 1e-5
LANE = 128


def _batchnorm_train(h):
    # Training-mode BatchNorm1d with gamma=1, beta=0 (module init):
    # one-pass stats: biased var = E[h^2] - mean^2, rsqrt on the EUP.
    mean = jnp.mean(h, axis=0, keepdims=True)
    msq = jnp.mean(h * h, axis=0, keepdims=True)
    var = msq - mean * mean
    return (h - mean) * jax.lax.rsqrt(var + EPS)


def resnet_mlp_kernel(x_ref, w1_ref, wa_ref, wb_ref, wf_ref, bf_ref, out_ref):
    # Stem: fc1 -> bn1 -> relu
    h = jnp.dot(x_ref[...], w1_ref[...], preferred_element_type=jnp.float32)
    h = jnp.maximum(_batchnorm_train(h), 0.0)

    # layer1: stack of BasicBlocks (static unroll; nblocks is small).
    nblocks = wa_ref.shape[0]
    for i in range(nblocks):
        identity = h
        o = jnp.dot(h, wa_ref[i], preferred_element_type=jnp.float32)
        o = jnp.maximum(_batchnorm_train(o), 0.0)
        o = jnp.dot(o, wb_ref[i], preferred_element_type=jnp.float32)
        o = _batchnorm_train(o)
        h = jnp.maximum(o + identity, 0.0)

    # flatten(1) is a no-op for 2-D activations; final fcf has a bias.
    # wf/bf are lane-padded to a multiple of 128 -> unmasked full-lane store.
    y = jnp.dot(h, wf_ref[...], preferred_element_type=jnp.float32) + bf_ref[...]
    out_ref[...] = y.astype(out_ref.dtype)


@jax.jit
def resnet_mlp_forward(x, w1, wa, wb, wf, bf):
    batch = x.shape[0]
    num_response = wf.shape[1]
    # Lane-dense output slab: pad the final projection to a multiple of 128
    # lanes (padded columns compute to exactly 0), slice back after the call.
    n_pad = ((num_response + LANE - 1) // LANE) * LANE
    wf_p = jnp.pad(wf, ((0, 0), (0, n_pad - num_response)))
    bf_p = jnp.pad(bf, ((0, 0), (0, n_pad - num_response)))

    vmem_spec = pl.BlockSpec(memory_space=pltpu.MemorySpace.VMEM)
    out_padded = pl.pallas_call(
        resnet_mlp_kernel,
        out_shape=jax.ShapeDtypeStruct((batch, n_pad), jnp.float32),
        in_specs=[vmem_spec] * 6,
        out_specs=vmem_spec,
    )(x, w1, wa, wb, wf_p, bf_p)
    return out_padded[:, :num_response]


def ref_forward(x, w1, wa, wb, wf, bf):
    # Pure-JAX reference of the same forward pass (for validation).
    def bn(h):
        m = h.mean(0, keepdims=True)
        v = ((h - m) ** 2).mean(0, keepdims=True)
        return (h - m) / jnp.sqrt(v + EPS)

    h = jnp.maximum(bn(x @ w1), 0.0)
    for i in range(wa.shape[0]):
        identity = h
        o = jnp.maximum(bn(h @ wa[i]), 0.0)
        o = bn(o @ wb[i])
        h = jnp.maximum(o + identity, 0.0)
    return h @ wf + bf


def kaiming_fan_out(key, in_features, out_features):
    # kaiming_normal_(mode='fan_out') for torch weight (out, in): std = sqrt(2/out).
    # Stored here pre-transposed as (in, out).
    std = (2.0 / out_features) ** 0.5
    return std * jax.random.normal(key, (in_features, out_features), jnp.float32)


if __name__ == "__main__":
    # Small shapes consistent with the module:
    #   ninput=16, ncellscale=2.0 -> width=32, layers=[2], num_response=4, batch=8
    batch, ninput, ncellscale, num_response = 8, 16, 2.0, 4
    nblocks = 2
    width = int(ninput * ncellscale)

    key = jax.random.PRNGKey(0)
    k_x, k_w1, k_wa, k_wb, k_wf, k_bf = jax.random.split(key, 6)

    x = jax.random.normal(k_x, (batch, ninput), jnp.float32)

    # Stem fc1: Linear(ninput, width, bias=False)
    w1 = kaiming_fan_out(k_w1, ninput, width)

    # BasicBlock fc1 / fc2 weights, stacked over blocks: (nblocks, width, width)
    ka = jax.random.split(k_wa, nblocks)
    kb = jax.random.split(k_wb, nblocks)
    wa = jnp.stack([kaiming_fan_out(ka[i], width, width) for i in range(nblocks)])
    wb = jnp.stack([kaiming_fan_out(kb[i], width, width) for i in range(nblocks)])

    # Final fcf: Linear(width, num_response) with bias (torch default uniform init
    # range; deterministic here).
    wf = kaiming_fan_out(k_wf, width, num_response)
    bound = 1.0 / (width ** 0.5)
    bf = jax.random.uniform(
        k_bf, (1, num_response), jnp.float32, minval=-bound, maxval=bound
    )

    out = jax.block_until_ready(resnet_mlp_forward(x, w1, wa, wb, wf, bf))
    ref = ref_forward(x, w1, wa, wb, wf, bf)

    assert out.shape == (batch, num_response)
    assert jnp.allclose(out, ref, rtol=1e-4, atol=1e-4), (
        f"mismatch: max abs err = {jnp.max(jnp.abs(out - ref))}"
    )
    print("KERNEL_OK")
</pallas_src>

<mosaic_0001>
module attributes {stable_mosaic.version = 11 : i64} {
  func.func @resnet_mlp_kernel(%arg0: memref<8x16xf32, #tpu.memory_space<vmem>>, %arg1: memref<16x32xf32, #tpu.memory_space<vmem>>, %arg2: memref<2x32x32xf32, #tpu.memory_space<vmem>>, %arg3: memref<2x32x32xf32, #tpu.memory_space<vmem>>, %arg4: memref<32x128xf32, #tpu.memory_space<vmem>>, %arg5: memref<1x128xf32, #tpu.memory_space<vmem>>, %arg6: memref<8x128xf32, #tpu.memory_space<vmem>>) attributes {dimension_semantics = [], scalar_prefetch = 0 : i64, scratch_operands = 0 : i64, tpu.core_type = #tpu.core_type<tc>} {
    %c0 = arith.constant 0 : index
    %c0_0 = arith.constant 0 : index
    %0 = vector.load %arg0[%c0, %c0_0] : memref<8x16xf32, #tpu.memory_space<vmem>>, vector<8x16xf32>
    %c0_1 = arith.constant 0 : index
    %c0_2 = arith.constant 0 : index
    %1 = vector.load %arg1[%c0_1, %c0_2] : memref<16x32xf32, #tpu.memory_space<vmem>>, vector<16x32xf32>
    %cst = arith.constant dense<0.000000e+00> : vector<8x32xf32>
    %2 = tpu.matmul %0, %1, %cst {dimension_numbers = #tpu.dot_dimension_numbers<[1], [0], [0], [1], [0, 0, 1, 1], [], []>} : vector<8x16xf32>, vector<16x32xf32>, vector<8x32xf32> -> vector<8x32xf32>
    %cst_3 = arith.constant dense<0.000000e+00> : vector<32xf32>
    %3 = vector.multi_reduction <add>, %2, %cst_3 [0] : vector<8x32xf32> to vector<32xf32>
    %4 = vector.shape_cast %3 : vector<32xf32> to vector<1x32xf32>
    %cst_4 = arith.constant 8.000000e+00 : f32
    %5 = vector.broadcast %cst_4 : f32 to vector<1x32xf32>
    %6 = arith.divf %4, %5 : vector<1x32xf32>
    %7 = arith.mulf %2, %2 : vector<8x32xf32>
    %cst_5 = arith.constant dense<0.000000e+00> : vector<32xf32>
    %8 = vector.multi_reduction <add>, %7, %cst_5 [0] : vector<8x32xf32> to vector<32xf32>
    %9 = vector.shape_cast %8 : vector<32xf32> to vector<1x32xf32>
    %cst_6 = arith.constant 8.000000e+00 : f32
    %10 = vector.broadcast %cst_6 : f32 to vector<1x32xf32>
    %11 = arith.divf %9, %10 : vector<1x32xf32>
    %12 = arith.mulf %6, %6 : vector<1x32xf32>
    %13 = arith.subf %11, %12 : vector<1x32xf32>
    %14 = vector.broadcast %6 : vector<1x32xf32> to vector<8x32xf32>
    %15 = arith.subf %2, %14 : vector<8x32xf32>
    %cst_7 = arith.constant 9.99999974E-6 : f32
    %16 = vector.broadcast %cst_7 : f32 to vector<1x32xf32>
    %17 = arith.addf %13, %16 : vector<1x32xf32>
    %18 = math.rsqrt %17 : vector<1x32xf32>
    %19 = vector.broadcast %18 : vector<1x32xf32> to vector<8x32xf32>
    %20 = arith.mulf %15, %19 : vector<8x32xf32>
    %cst_8 = arith.constant 0.000000e+00 : f32
    %21 = vector.broadcast %cst_8 : f32 to vector<8x32xf32>
    %22 = arith.maximumf %20, %21 : vector<8x32xf32>
    %c0_9 = arith.constant 0 : index
    %c0_10 = arith.constant 0 : index
    %c0_11 = arith.constant 0 : index
    %23 = vector.load %arg2[%c0_9, %c0_10, %c0_11] : memref<2x32x32xf32, #tpu.memory_space<vmem>>, vector<1x32x32xf32>
    %24 = vector.shape_cast %23 : vector<1x32x32xf32> to vector<32x32xf32>
    %cst_12 = arith.constant dense<0.000000e+00> : vector<8x32xf32>
    %25 = tpu.matmul %22, %24, %cst_12 {dimension_numbers = #tpu.dot_dimension_numbers<[1], [0], [0], [1], [0, 0, 1, 1], [], []>} : vector<8x32xf32>, vector<32x32xf32>, vector<8x32xf32> -> vector<8x32xf32>
    %cst_13 = arith.constant dense<0.000000e+00> : vector<32xf32>
    %26 = vector.multi_reduction <add>, %25, %cst_13 [0] : vector<8x32xf32> to vector<32xf32>
    %27 = vector.shape_cast %26 : vector<32xf32> to vector<1x32xf32>
    %cst_14 = arith.constant 8.000000e+00 : f32
    %28 = vector.broadcast %cst_14 : f32 to vector<1x32xf32>
    %29 = arith.divf %27, %28 : vector<1x32xf32>
    %30 = arith.mulf %25, %25 : vector<8x32xf32>
    %cst_15 = arith.constant dense<0.000000e+00> : vector<32xf32>
    %31 = vector.multi_reduction <add>, %30, %cst_15 [0] : vector<8x32xf32> to vector<32xf32>
    %32 = vector.shape_cast %31 : vector<32xf32> to vector<1x32xf32>
    %cst_16 = arith.constant 8.000000e+00 : f32
    %33 = vector.broadcast %cst_16 : f32 to vector<1x32xf32>
    %34 = arith.divf %32, %33 : vector<1x32xf32>
    %35 = arith.mulf %29, %29 : vector<1x32xf32>
    %36 = arith.subf %34, %35 : vector<1x32xf32>
    %37 = vector.broadcast %29 : vector<1x32xf32> to vector<8x32xf32>
    %38 = arith.subf %25, %37 : vector<8x32xf32>
    %cst_17 = arith.constant 9.99999974E-6 : f32
    %39 = vector.broadcast %cst_17 : f32 to vector<1x32xf32>
    %40 = arith.addf %36, %39 : vector<1x32xf32>
    %41 = math.rsqrt %40 : vector<1x32xf32>
    %42 = vector.broadcast %41 : vector<1x32xf32> to vector<8x32xf32>
    %43 = arith.mulf %38, %42 : vector<8x32xf32>
    %cst_18 = arith.constant 0.000000e+00 : f32
    %44 = vector.broadcast %cst_18 : f32 to vector<8x32xf32>
    %45 = arith.maximumf %43, %44 : vector<8x32xf32>
    %c0_19 = arith.constant 0 : index
    %c0_20 = arith.constant 0 : index
    %c0_21 = arith.constant 0 : index
    %46 = vector.load %arg3[%c0_19, %c0_20, %c0_21] : memref<2x32x32xf32, #tpu.memory_space<vmem>>, vector<1x32x32xf32>
    %47 = vector.shape_cast %46 : vector<1x32x32xf32> to vector<32x32xf32>
    %cst_22 = arith.constant dense<0.000000e+00> : vector<8x32xf32>
    %48 = tpu.matmul %45, %47, %cst_22 {dimension_numbers = #tpu.dot_dimension_numbers<[1], [0], [0], [1], [0, 0, 1, 1], [], []>} : vector<8x32xf32>, vector<32x32xf32>, vector<8x32xf32> -> vector<8x32xf32>
    %cst_23 = arith.constant dense<0.000000e+00> : vector<32xf32>
    %49 = vector.multi_reduction <add>, %48, %cst_23 [0] : vector<8x32xf32> to vector<32xf32>
    %50 = vector.shape_cast %49 : vector<32xf32> to vector<1x32xf32>
    %cst_24 = arith.constant 8.000000e+00 : f32
    %51 = vector.broadcast %cst_24 : f32 to vector<1x32xf32>
    %52 = arith.divf %50, %51 : vector<1x32xf32>
    %53 = arith.mulf %48, %48 : vector<8x32xf32>
    %cst_25 = arith.constant dense<0.000000e+00> : vector<32xf32>
    %54 = vector.multi_reduction <add>, %53, %cst_25 [0] : vector<8x32xf32> to vector<32xf32>
    %55 = vector.shape_cast %54 : vector<32xf32> to vector<1x32xf32>
    %cst_26 = arith.constant 8.000000e+00 : f32
    %56 = vector.broadcast %cst_26 : f32 to vector<1x32xf32>
    %57 = arith.divf %55, %56 : vector<1x32xf32>
    %58 = arith.mulf %52, %52 : vector<1x32xf32>
    %59 = arith.subf %57, %58 : vector<1x32xf32>
    %60 = vector.broadcast %52 : vector<1x32xf32> to vector<8x32xf32>
    %61 = arith.subf %48, %60 : vector<8x32xf32>
    %cst_27 = arith.constant 9.99999974E-6 : f32
    %62 = vector.broadcast %cst_27 : f32 to vector<1x32xf32>
    %63 = arith.addf %59, %62 : vector<1x32xf32>
    %64 = math.rsqrt %63 : vector<1x32xf32>
    %65 = vector.broadcast %64 : vector<1x32xf32> to vector<8x32xf32>
    %66 = arith.mulf %61, %65 : vector<8x32xf32>
    %67 = arith.addf %66, %22 : vector<8x32xf32>
    %cst_28 = arith.constant 0.000000e+00 : f32
    %68 = vector.broadcast %cst_28 : f32 to vector<8x32xf32>
    %69 = arith.maximumf %67, %68 : vector<8x32xf32>
    %c1 = arith.constant 1 : index
    %c0_29 = arith.constant 0 : index
    %c0_30 = arith.constant 0 : index
    %70 = vector.load %arg2[%c1, %c0_29, %c0_30] : memref<2x32x32xf32, #tpu.memory_space<vmem>>, vector<1x32x32xf32>
    %71 = vector.shape_cast %70 : vector<1x32x32xf32> to vector<32x32xf32>
    %cst_31 = arith.constant dense<0.000000e+00> : vector<8x32xf32>
    %72 = tpu.matmul %69, %71, %cst_31 {dimension_numbers = #tpu.dot_dimension_numbers<[1], [0], [0], [1], [0, 0, 1, 1], [], []>} : vector<8x32xf32>, vector<32x32xf32>, vector<8x32xf32> -> vector<8x32xf32>
    %cst_32 = arith.constant dense<0.000000e+00> : vector<32xf32>
    %73 = vector.multi_reduction <add>, %72, %cst_32 [0] : vector<8x32xf32> to vector<32xf32>
    %74 = vector.shape_cast %73 : vector<32xf32> to vector<1x32xf32>
    %cst_33 = arith.constant 8.000000e+00 : f32
    %75 = vector.broadcast %cst_33 : f32 to vector<1x32xf32>
    %76 = arith.divf %74, %75 : vector<1x32xf32>
    %77 = arith.mulf %72, %72 : vector<8x32xf32>
    %cst_34 = arith.constant dense<0.000000e+00> : vector<32xf32>
    %78 = vector.multi_reduction <add>, %77, %cst_34 [0] : vector<8x32xf32> to vector<32xf32>
    %79 = vector.shape_cast %78 : vector<32xf32> to vector<1x32xf32>
    %cst_35 = arith.constant 8.000000e+00 : f32
    %80 = vector.broadcast %cst_35 : f32 to vector<1x32xf32>
    %81 = arith.divf %79, %80 : vector<1x32xf32>
    %82 = arith.mulf %76, %76 : vector<1x32xf32>
    %83 = arith.subf %81, %82 : vector<1x32xf32>
    %84 = vector.broadcast %76 : vector<1x32xf32> to vector<8x32xf32>
    %85 = arith.subf %72, %84 : vector<8x32xf32>
    %cst_36 = arith.constant 9.99999974E-6 : f32
    %86 = vector.broadcast %cst_36 : f32 to vector<1x32xf32>
    %87 = arith.addf %83, %86 : vector<1x32xf32>
    %88 = math.rsqrt %87 : vector<1x32xf32>
    %89 = vector.broadcast %88 : vector<1x32xf32> to vector<8x32xf32>
    %90 = arith.mulf %85, %89 : vector<8x32xf32>
    %cst_37 = arith.constant 0.000000e+00 : f32
    %91 = vector.broadcast %cst_37 : f32 to vector<8x32xf32>
    %92 = arith.maximumf %90, %91 : vector<8x32xf32>
    %c1_38 = arith.constant 1 : index
    %c0_39 = arith.constant 0 : index
    %c0_40 = arith.constant 0 : index
    %93 = vector.load %arg3[%c1_38, %c0_39, %c0_40] : memref<2x32x32xf32, #tpu.memory_space<vmem>>, vector<1x32x32xf32>
    %94 = vector.shape_cast %93 : vector<1x32x32xf32> to vector<32x32xf32>
    %cst_41 = arith.constant dense<0.000000e+00> : vector<8x32xf32>
    %95 = tpu.matmul %92, %94, %cst_41 {dimension_numbers = #tpu.dot_dimension_numbers<[1], [0], [0], [1], [0, 0, 1, 1], [], []>} : vector<8x32xf32>, vector<32x32xf32>, vector<8x32xf32> -> vector<8x32xf32>
    %cst_42 = arith.constant dense<0.000000e+00> : vector<32xf32>
    %96 = vector.multi_reduction <add>, %95, %cst_42 [0] : vector<8x32xf32> to vector<32xf32>
    %97 = vector.shape_cast %96 : vector<32xf32> to vector<1x32xf32>
    %cst_43 = arith.constant 8.000000e+00 : f32
    %98 = vector.broadcast %cst_43 : f32 to vector<1x32xf32>
    %99 = arith.divf %97, %98 : vector<1x32xf32>
    %100 = arith.mulf %95, %95 : vector<8x32xf32>
    %cst_44 = arith.constant dense<0.000000e+00> : vector<32xf32>
    %101 = vector.multi_reduction <add>, %100, %cst_44 [0] : vector<8x32xf32> to vector<32xf32>
    %102 = vector.shape_cast %101 : vector<32xf32> to vector<1x32xf32>
    %cst_45 = arith.constant 8.000000e+00 : f32
    %103 = vector.broadcast %cst_45 : f32 to vector<1x32xf32>
    %104 = arith.divf %102, %103 : vector<1x32xf32>
    %105 = arith.mulf %99, %99 : vector<1x32xf32>
    %106 = arith.subf %104, %105 : vector<1x32xf32>
    %107 = vector.broadcast %99 : vector<1x32xf32> to vector<8x32xf32>
    %108 = arith.subf %95, %107 : vector<8x32xf32>
    %cst_46 = arith.constant 9.99999974E-6 : f32
    %109 = vector.broadcast %cst_46 : f32 to vector<1x32xf32>
    %110 = arith.addf %106, %109 : vector<1x32xf32>
    %111 = math.rsqrt %110 : vector<1x32xf32>
    %112 = vector.broadcast %111 : vector<1x32xf32> to vector<8x32xf32>
    %113 = arith.mulf %108, %112 : vector<8x32xf32>
    %114 = arith.addf %113, %69 : vector<8x32xf32>
    %cst_47 = arith.constant 0.000000e+00 : f32
    %115 = vector.broadcast %cst_47 : f32 to vector<8x32xf32>
    %116 = arith.maximumf %114, %115 : vector<8x32xf32>
    %c0_48 = arith.constant 0 : index
    %c0_49 = arith.constant 0 : index
    %117 = vector.load %arg4[%c0_48, %c0_49] : memref<32x128xf32, #tpu.memory_space<vmem>>, vector<32x128xf32>
    %cst_50 = arith.constant dense<0.000000e+00> : vector<8x128xf32>
    %118 = tpu.matmul %116, %117, %cst_50 {dimension_numbers = #tpu.dot_dimension_numbers<[1], [0], [0], [1], [0, 0, 1, 1], [], []>} : vector<8x32xf32>, vector<32x128xf32>, vector<8x128xf32> -> vector<8x128xf32>
    %c0_51 = arith.constant 0 : index
    %c0_52 = arith.constant 0 : index
    %119 = vector.load %arg5[%c0_51, %c0_52] : memref<1x128xf32, #tpu.memory_space<vmem>>, vector<1x128xf32>
    %120 = vector.broadcast %119 : vector<1x128xf32> to vector<8x128xf32>
    %121 = arith.addf %118, %120 : vector<8x128xf32>
    %c0_53 = arith.constant 0 : index
    %c0_54 = arith.constant 0 : index
    %122 = vector.load %arg6[%c0_53, %c0_54] : memref<8x128xf32, #tpu.memory_space<vmem>>, vector<8x128xf32>
    tpu.vector_store %arg6[%c0_53, %c0_54], %121 {strides = array<i32>} : memref<8x128xf32, #tpu.memory_space<vmem>>, vector<8x128xf32>,
    return
  }
}

</mosaic_0001>

<bundles_post_ra>
// kernel: resnet_mlp_forward.1
= control target key start
LH: loop header
LB: loop body
LE: loop exit
PB: predicated region body
PF: predicated region fallthrough
CT: control target
= control target key end

     0   :  { %11 = vsyncpa [#allocation3], 0  ;;  %s776_s21 = smov [#allocation2]   ;;  %s933_s0 = inlined_call_operand.vmem [shape: f32[8,16], index: 0, kind: input, shape index: {}]   ;;  %s934_s1 = inlined_call_operand.vmem [shape: f32[16,32], index: 1, kind: input, shape index: {}]   ;;  %s935_s2 = inlined_call_operand.vmem [shape: f32[2,32,32], index: 2, kind: input, shape index: {}]   ;;  %s936_s3 = inlined_call_operand.hbm [shape: f32[2,32,32], index: 3, kind: input, shape index: {}]   ;;  %s937_s4 = inlined_call_operand.vmem [shape: f32[32,128], index: 4, kind: input, shape index: {}]   ;;  %s938_s5 = inlined_call_operand.vmem [shape: f32[1,128], index: 5, kind: input, shape index: {}]   ;;  %s939_s6 = inlined_call_operand.vmem [shape: f32[8,128], index: 6, kind: output, shape index: {}]  }
   0x1   :  { %s23_s22 = sshll.u32 %s776_s21, 4  ;;  %s24_s22 = int_to_ptr.vmem [resolvable:$true] %s23_s22 }
   0x2   :  { %s762_s23 = scalar_lea.vmem %s24_s22, 1024  ;;  %p767_p1 = scmp.lt.s32.totalorder %s24_s22, %s24_s22 }
   0x3   :  { %p763_p0 = scmp.ne.s32.totalorder %s24_s22, %s762_s23  ;;  %p768_p2 = scmp.lt.s32.totalorder %s762_s23, %s762_s23 }
   0x5   :  { %p769_p3 = por %p768_p2, %p767_p1 }
   0x7   :  { %p770_p4 = pnand %p769_p3, %p763_p0 }
   0x9   :  { %773 = shalt.err (!%p770_p4)
}
   0xa   :  { %s777_s24 = smov 128   ;;  %s778_s25 = smov 8  }
   0xb   :  { %29 = dma.hbm_to_vmem [thread:$0]  %s936_s3, 1024, %s24_s22, [#allocation3], %s777_s24, %s777_s24, %s778_s25  }
   0xc   :  { %774 = dma.done.wait [#allocation3], 1024  }
   0xd   :  { %775 = vsyncadd [#allocation3], 4294966272  ;;  %v779_v0 = vmov 0.0   ;;  %vm780_vm0 = vmmov 0   ;;  %v39_v1 = vld [vmem:[%s934_s1 + $0x8] sm:$0xff]  ;;  %v38_v2 = vld [vmem:[%s934_s1] sm:$0xff] }
   0xe   :  { %677 = vmatprep.subr.mxu0 %v779_v0  ;;  %681 = vmatprep.mubr.msk.f32.mxu0 %vm780_vm0, %v779_v0  ;;  %v37_v3 = vld [vmem:[%s933_s0] sm:$0xff]  ;;  %vm40_vm1 = vcmask 130048   ;;  %v143_v4 = vld [vmem:[%s935_s2 + $0x18] sm:$0xff]  ;;  %v142_v5 = vld [vmem:[%s935_s2 + $0x10] sm:$0xff]  ;;  %vm114_vm2 = vcmask 261120  }
   0xf   :  { %684 = vmatprep.subr.mxu1 %v779_v0  ;;  %692 = vmatprep.mubr.msk.f32.mxu1 %vm780_vm0, %v779_v0  ;;  %v141_v6 = vld [vmem:[%s935_s2 + $0x8] sm:$0xff]  ;;  %v140_v7 = vld [vmem:[%s935_s2] sm:$0xff]  ;;  %v244_v34 = vld [vmem:[#allocation2 + $0x18] sm:$0xff] }
  0x10   :  { %678 = vmatpush3.msra.mxu0 %v39_v1  ;;  %685 = vmatpush3.msra.mxu1 %v143_v4  ;;  %v243_v35 = vld [vmem:[#allocation2 + $0x10] sm:$0xff]  ;;  %v242_v36 = vld [vmem:[#allocation2 + $0x8] sm:$0xff]  ;;  %v241_v37 = vld [vmem:[#allocation2] sm:$0xff] }
  0x11   :  { %679 = vmatprep.subr.mxu0 %v779_v0  ;;  %686 = vmatprep.subr.mxu1 %v779_v0  ;;  %v644_v1 = vld [vmem:[%s935_s2 + $0x38] sm:$0xff]  ;;  %v641_v4 = vld [vmem:[%s935_s2 + $0x20] sm:$0xff] }
  0x12   :  { %680 = vmatpush3.msra.mxu0 %v38_v2  ;;  %687 = vmatpush3.msra.mxu1 %v142_v5  ;;  %v643_v2 = vld [vmem:[%s935_s2 + $0x30] sm:$0xff] }
  0x13   :  { %682 = vmatmul.mubr.msk.f32.vlgmr.msra.gmra.mxu0 %vm40_vm1, %v37_v3  ;;  %695 = vmatprep.subr.mxu0 %v779_v0  ;;  %v642_v3 = vld [vmem:[%s935_s2 + $0x28] sm:$0xff] }
  0x14   :  { %703 = vmatprep.mubr.msk.f32.mxu0 %vm780_vm0, %v779_v0  ;;  %688 = vmatprep.subr.mxu1 %v779_v0 }
  0x15   :  { %689 = vmatpush3.msra.mxu1 %v141_v6  ;;  %696 = vmatpush3.msra.mxu0 %v244_v34  ;;  %v449_v34 = vld [vmem:[#allocation2 + $0x38] sm:$0xff] }
  0x16   :  { %690 = vmatprep.subr.mxu1 %v779_v0  ;;  %697 = vmatprep.subr.mxu0 %v779_v0 }
  0x17   :  { %691 = vmatpush3.msra.mxu1 %v140_v7  ;;  %698 = vmatpush3.msra.mxu0 %v243_v35  ;;  %v448_v35 = vld [vmem:[#allocation2 + $0x30] sm:$0xff] }
  0x18   :  { %706 = vmatprep.subr.mxu1 %v779_v0  ;;  %699 = vmatprep.subr.mxu0 %v779_v0 }
  0x19   :  { %700 = vmatpush3.msra.mxu0 %v242_v36 }
  0x1a   :  { %701 = vmatprep.subr.mxu0 %v779_v0 }
  0x1b   :  { %702 = vmatpush3.msra.mxu0 %v241_v37 }
  0x1c   :  { %717 = vmatprep.subr.mxu0 %v779_v0 }
  0xd3   :  { %v110_v8 = vpop.f32.mrf.mxu0 }
  0xd4   :  { %v115_v9 = vsel %vm114_vm2, %v110_v8, 0.0  ;;  %v124_v10 = vmul.f32 %v110_v8, %v110_v8 }
  0xd5   :  { %v116_v11 = vrot.slane %v115_v9, 4  ;;  %v683_v12 = vpop.f32.mrf.mxu0 }
  0xd6   :  { %v125_v13 = vsel %vm114_vm2, %v124_v10, 0.0 }
  0xd7   :  { %v117_v14 = vadd.f32 %v116_v11, %v115_v9  ;;  %v126_v15 = vrot.slane %v125_v13, 4 }
  0xd9   :  { %v118_v16 = vrot.slane %v117_v14, 2  ;;  %v127_v17 = vadd.f32 %v126_v15, %v125_v13 }
  0xdb   :  { %v119_v18 = vadd.f32 %v118_v16, %v117_v14  ;;  %v128_v19 = vrot.slane %v127_v17, 2 }
  0xdd   :  { %v120_v20 = vrot.slane %v119_v18, 1  ;;  %v129_v21 = vadd.f32 %v128_v19, %v127_v17 }
  0xdf   :  { %v121_v22 = vadd.f32 %v120_v20, %v119_v18  ;;  %v130_v23 = vrot.slane %v129_v21, 1 }
  0xe1   :  { %v123_v24 = vmul.f32 0.125, %v121_v22  ;;  %v131_v25 = vadd.f32 %v130_v23, %v129_v21 }
  0xe3   :  { %v132_v26 = vmul.f32 0.125, %v131_v25  ;;  %v133_v27 = vmul.f32 %v123_v24, %v123_v24  ;;  %v135_v30 = vsub.f32 %v110_v8, %v123_v24 }
  0xe5   :  { %v134_v28 = vsub.f32 %v132_v26, %v133_v27 }
  0xe7   :  { %v136_v29 = vadd.f32 1e-05, %v134_v28 }
  0xe9   :  { %744 = vrsqrt.f32 %v136_v29 }
  0xf6   :  { %v745_v31 = vpop.eup %744 }
  0xf7   :  { %v856_v32 = vmul.f32 %v745_v31, %v135_v30 }
  0xf9   :  { %v139_v33 = vmax.f32 %v856_v32, 0.0  ;;  %v447_v32 = vld [vmem:[#allocation2 + $0x28] sm:$0xff] }
  0xfb   :  { %693 = vmatmul.mubr.msk.f32.vlgmr.msra.gmra.mxu1 %vm114_vm2, %v139_v33 }
  0xfc   :  { %714 = vmatprep.mubr.msk.f32.mxu1 %vm780_vm0, %v779_v0  ;;  %707 = vmatpush3.msra.mxu1 %v644_v1  ;;  %v549_v1 = vld [vmem:[%s937_s4 + $0x8] sm:$0xff] }
  0xfd   :  { %708 = vmatprep.subr.mxu1 %v779_v0 }
  0xfe   :  { %709 = vmatpush3.msra.mxu1 %v643_v2  ;;  %v548_v2 = vld [vmem:[%s937_s4] sm:$0xff] }
  0xff   :  { %710 = vmatprep.subr.mxu1 %v779_v0 }
 0x100   :  { %711 = vmatpush3.msra.mxu1 %v642_v3 }
 0x101   :  { %712 = vmatprep.subr.mxu1 %v779_v0 }
 0x102   :  { %713 = vmatpush3.msra.mxu1 %v641_v4 }
 0x103   :  { %728 = vmatprep.subr.mxu1 %v779_v0 }
 0x1bb   :  { %v213_v38 = vpop.f32.mrf.mxu1 }
 0x1bc   :  { %v217_v39 = vsel %vm114_vm2, %v213_v38, 0.0  ;;  %v225_v40 = vmul.f32 %v213_v38, %v213_v38 }
 0x1bd   :  { %v218_v41 = vrot.slane %v217_v39, 4  ;;  %v694_v42 = vpop.f32.mrf.mxu1 }
 0x1be   :  { %v226_v43 = vsel %vm114_vm2, %v225_v40, 0.0 }
 0x1bf   :  { %v219_v44 = vadd.f32 %v218_v41, %v217_v39  ;;  %v227_v45 = vrot.slane %v226_v43, 4 }
 0x1c1   :  { %v220_v46 = vrot.slane %v219_v44, 2  ;;  %v228_v47 = vadd.f32 %v227_v45, %v226_v43 }
 0x1c3   :  { %v221_v48 = vadd.f32 %v220_v46, %v219_v44  ;;  %v229_v49 = vrot.slane %v228_v47, 2 }
 0x1c5   :  { %v222_v50 = vrot.slane %v221_v48, 1  ;;  %v230_v51 = vadd.f32 %v229_v49, %v228_v47 }
 0x1c7   :  { %v223_v52 = vadd.f32 %v222_v50, %v221_v48  ;;  %v231_v53 = vrot.slane %v230_v51, 1 }
 0x1c9   :  { %v224_v54 = vmul.f32 0.125, %v223_v52  ;;  %v232_v55 = vadd.f32 %v231_v53, %v230_v51 }
 0x1cb   :  { %v233_v56 = vmul.f32 0.125, %v232_v55  ;;  %v234_v57 = vmul.f32 %v224_v54, %v224_v54  ;;  %v236_v60 = vsub.f32 %v213_v38, %v224_v54 }
 0x1cd   :  { %v235_v58 = vsub.f32 %v233_v56, %v234_v57 }
 0x1cf   :  { %v237_v59 = vadd.f32 1e-05, %v235_v58 }
 0x1d1   :  { %746 = vrsqrt.f32 %v237_v59 }
 0x1de   :  { %v747_v61 = vpop.eup %746 }
 0x1df   :  { %v239_v62 = vmul.f32 %v747_v61, %v236_v60 }
 0x1e1   :  { %v240_v63 = vmax.f32 %v239_v62, 0.0  ;;  %v551_v62 = vld [vmem:[%s937_s4 + $0x18] sm:$0xff] }
 0x1e3   :  { %704 = vmatmul.mubr.msk.f32.vlgmr.msra.gmra.mxu0 %vm114_vm2, %v240_v63  ;;  %v550_v63 = vld [vmem:[%s937_s4 + $0x10] sm:$0xff] }
 0x1e4   :  { %725 = vmatprep.mubr.msk.f32.mxu0 %vm780_vm0, %v779_v0  ;;  %718 = vmatpush3.msra.mxu0 %v449_v34 }
 0x1e5   :  { %719 = vmatprep.subr.mxu0 %v779_v0 }
 0x1e6   :  { %720 = vmatpush3.msra.mxu0 %v448_v35 }
 0x1e7   :  { %721 = vmatprep.subr.mxu0 %v779_v0 }
 0x1e8   :  { %722 = vmatpush3.msra.mxu0 %v447_v32 }
 0x1e9   :  { %723 = vmatprep.subr.mxu0 %v779_v0 }
 0x2a3   :  { %v314_v5 = vpop.f32.mrf.mxu0 }
 0x2a4   :  { %v318_v6 = vsel %vm114_vm2, %v314_v5, 0.0  ;;  %v326_v7 = vmul.f32 %v314_v5, %v314_v5 }
 0x2a5   :  { %v319_v8 = vrot.slane %v318_v6, 4  ;;  %v705_v9 = vpop.f32.mrf.mxu0 }
 0x2a6   :  { %v327_v10 = vsel %vm114_vm2, %v326_v7, 0.0 }
 0x2a7   :  { %v320_v11 = vadd.f32 %v319_v8, %v318_v6  ;;  %v328_v12 = vrot.slane %v327_v10, 4 }
 0x2a9   :  { %v321_v13 = vrot.slane %v320_v11, 2  ;;  %v329_v14 = vadd.f32 %v328_v12, %v327_v10 }
 0x2ab   :  { %v322_v15 = vadd.f32 %v321_v13, %v320_v11  ;;  %v330_v16 = vrot.slane %v329_v14, 2 }
 0x2ad   :  { %v323_v17 = vrot.slane %v322_v15, 1  ;;  %v331_v18 = vadd.f32 %v330_v16, %v329_v14 }
 0x2af   :  { %v324_v19 = vadd.f32 %v323_v17, %v322_v15  ;;  %v332_v20 = vrot.slane %v331_v18, 1 }
 0x2b1   :  { %v325_v21 = vmul.f32 0.125, %v324_v19  ;;  %v333_v22 = vadd.f32 %v332_v20, %v331_v18 }
 0x2b3   :  { %v334_v23 = vmul.f32 0.125, %v333_v22  ;;  %v335_v24 = vmul.f32 %v325_v21, %v325_v21  ;;  %v337_v27 = vsub.f32 %v314_v5, %v325_v21 }
 0x2b5   :  { %v336_v25 = vsub.f32 %v334_v23, %v335_v24 }
 0x2b7   :  { %v338_v26 = vadd.f32 1e-05, %v336_v25 }
 0x2b9   :  { %748 = vrsqrt.f32 %v338_v26 }
 0x2c6   :  { %v749_v28 = vpop.eup %748 }
 0x2c7   :  { %v340_v29 = vmul.f32 %v749_v28, %v337_v27 }
 0x2c9   :  { %v893_v30 = vadd.f32 %v340_v29, %v139_v33  ;;  %v446_v33 = vld [vmem:[#allocation2 + $0x20] sm:$0xff] }
 0x2ca   :  { %724 = vmatpush3.msra.mxu0 %v446_v33  ;;  %v647_v29 = vld [vmem:[%s938_s5] ss:$0 sm:$0xff] }
 0x2cb   :  { %v342_v31 = vmax.f32 %v893_v30, 0.0 }
 0x2cd   :  { %715 = vmatmul.mubr.msk.f32.vlgmr.msra.gmra.mxu1 %vm114_vm2, %v342_v31 }
 0x2ce   :  { %736 = vmatprep.mubr.msk.f32.mxu1 %vm780_vm0, %v779_v0  ;;  %729 = vmatpush3.msra.mxu1 %v551_v62 }
 0x2cf   :  { %730 = vmatprep.subr.mxu1 %v779_v0 }
 0x2d0   :  { %731 = vmatpush3.msra.mxu1 %v550_v63 }
 0x2d1   :  { %732 = vmatprep.subr.mxu1 %v779_v0 }
 0x2d2   :  { %733 = vmatpush3.msra.mxu1 %v549_v1 }
 0x2d3   :  { %734 = vmatprep.subr.mxu1 %v779_v0 }
 0x2d4   :  { %735 = vmatpush3.msra.mxu1 %v548_v2 }
 0x38d   :  { %v417_v36 = vpop.f32.mrf.mxu1 }
 0x38e   :  { %v421_v37 = vsel %vm114_vm2, %v417_v36, 0.0  ;;  %v429_v38 = vmul.f32 %v417_v36, %v417_v36 }
 0x38f   :  { %v422_v39 = vrot.slane %v421_v37, 4  ;;  %v716_v40 = vpop.f32.mrf.mxu1 }
 0x390   :  { %v430_v41 = vsel %vm114_vm2, %v429_v38, 0.0 }
 0x391   :  { %v423_v42 = vadd.f32 %v422_v39, %v421_v37  ;;  %v431_v43 = vrot.slane %v430_v41, 4 }
 0x393   :  { %v424_v44 = vrot.slane %v423_v42, 2  ;;  %v432_v45 = vadd.f32 %v431_v43, %v430_v41 }
 0x395   :  { %v425_v46 = vadd.f32 %v424_v44, %v423_v42  ;;  %v433_v47 = vrot.slane %v432_v45, 2 }
 0x397   :  { %v426_v48 = vrot.slane %v425_v46, 1  ;;  %v434_v49 = vadd.f32 %v433_v47, %v432_v45 }
 0x399   :  { %v427_v50 = vadd.f32 %v426_v48, %v425_v46  ;;  %v435_v51 = vrot.slane %v434_v49, 1 }
 0x39b   :  { %v428_v52 = vmul.f32 0.125, %v427_v50  ;;  %v436_v53 = vadd.f32 %v435_v51, %v434_v49 }
 0x39d   :  { %v437_v54 = vmul.f32 0.125, %v436_v53  ;;  %v438_v55 = vmul.f32 %v428_v52, %v428_v52  ;;  %v440_v58 = vsub.f32 %v417_v36, %v428_v52 }
 0x39f   :  { %v439_v56 = vsub.f32 %v437_v54, %v438_v55 }
 0x3a1   :  { %v441_v57 = vadd.f32 1e-05, %v439_v56 }
 0x3a3   :  { %750 = vrsqrt.f32 %v441_v57 }
 0x3b0   :  { %v751_v59 = vpop.eup %750 }
 0x3b1   :  { %v443_v60 = vmul.f32 %v751_v59, %v440_v58 }
 0x3b3   :  { %v444_v61 = vmax.f32 %v443_v60, 0.0 }
 0x3b5   :  { %726 = vmatmul.mubr.msk.f32.vlgmr.msra.gmra.mxu0 %vm114_vm2, %v444_v61 }
 0x475   :  { %v519_v3 = vpop.f32.mrf.mxu0 }
 0x476   :  { %v523_v4 = vsel %vm114_vm2, %v519_v3, 0.0  ;;  %v531_v5 = vmul.f32 %v519_v3, %v519_v3 }
 0x477   :  { %v524_v6 = vrot.slane %v523_v4, 4  ;;  %v727_v7 = vpop.f32.mrf.mxu0 }
 0x478   :  { %v532_v8 = vsel %vm114_vm2, %v531_v5, 0.0 }
 0x479   :  { %v525_v9 = vadd.f32 %v524_v6, %v523_v4  ;;  %v533_v10 = vrot.slane %v532_v8, 4 }
 0x47b   :  { %v526_v11 = vrot.slane %v525_v9, 2  ;;  %v534_v12 = vadd.f32 %v533_v10, %v532_v8 }
 0x47d   :  { %v527_v13 = vadd.f32 %v526_v11, %v525_v9  ;;  %v535_v14 = vrot.slane %v534_v12, 2 }
 0x47f   :  { %v528_v0 = vrot.slane %v527_v13, 1  ;;  %v536_v15 = vadd.f32 %v535_v14, %v534_v12 }
 0x481   :  { %v529_v16 = vadd.f32 %v528_v0, %v527_v13  ;;  %v537_v17 = vrot.slane %v536_v15, 1 }
 0x483   :  { %v530_v18 = vmul.f32 0.125, %v529_v16  ;;  %v538_v19 = vadd.f32 %v537_v17, %v536_v15 }
 0x485   :  { %v539_v20 = vmul.f32 0.125, %v538_v19  ;;  %v540_v21 = vmul.f32 %v530_v18, %v530_v18  ;;  %v542_v24 = vsub.f32 %v519_v3, %v530_v18 }
 0x487   :  { %v541_v22 = vsub.f32 %v539_v20, %v540_v21 }
 0x489   :  { %v543_v23 = vadd.f32 1e-05, %v541_v22 }
 0x48b   :  { %752 = vrsqrt.f32 %v543_v23 }
 0x498   :  { %v753_v25 = vpop.eup %752 }
 0x499   :  { %v545_v26 = vmul.f32 %v753_v25, %v542_v24 }
 0x49b   :  { %v546_v27 = vadd.f32 %v545_v26, %v342_v31 }
 0x49d   :  { %v547_v28 = vmax.f32 %v546_v27, 0.0 }
 0x49f   :  { %737 = vmatmul.mubr.msk.f32.vlgmr.msra.gmra.mxu1 %vm114_vm2, %v547_v28 }
 0x55f   :  { %v628_v34 = vpop.f32.mrf.mxu1 }
 0x560   :  { %v629_v35 = vadd.f32 %v647_v29, %v628_v34 }
 0x561   :  { %v738_v32 = vpop.f32.mrf.mxu1 }
 0x562   :  { %632 = vst [vmem:[%s939_s6] sm:$0xff] %v629_v35 }
 0x563   :  { %637 = vsyncpa [#allocation3], 1 }

</bundles_post_ra>
